<compile_context>
chip_gen: v6e
topology: v6e:2x2x1
jax: 0.10.0
libtpu: 0.0.40
codegen_flags: <defaults>
</compile_context>

<pallas_src>
import math

import jax
import jax.numpy as jnp
from jax.experimental import pallas as pl
from jax.experimental.pallas import tpu as pltpu

POP_SHAPE = (8, 128)     # population topology -> (sublane, lane) of one vreg
DT = 0.001               # InputPopulation default dt
TAU_S = 10.0             # InputPopulation default tau_s
TRACE_SCALE = 1.0        # default trace_scale


def _input_population_kernel(params_ref, traces_init_ref, spikes_ref,
                             traces_ref):
    """One grid step == one simulation step t.

    params_ref      : SMEM f32[2] = [trace_decay, trace_scale]
    traces_init_ref : VMEM f32[R, C]   initial trace state (same block every t)
    spikes_ref      : VMEM i8 [1, R, C] spike pattern of step t (0/1)
    traces_ref      : VMEM f32[R, C]   trace state, resident across the grid
                      (constant output block index -> single HBM writeback)
    """
    t = pl.program_id(0)
    trace_decay = params_ref[0]
    trace_scale = params_ref[1]

    # Load the initial state into the resident accumulator on the first step.
    @pl.when(t == 0)
    def _():
        traces_ref[...] = traces_init_ref[...]

    # self.s = input spikes;  traces = traces*decay + trace_scale*s.float()
    s_f = spikes_ref[0].astype(jnp.float32)
    traces_ref[...] = traces_ref[...] * trace_decay + trace_scale * s_f


def input_population_forward(spikes, traces_state, dt=DT, tau_s=TAU_S,
                             trace_scale=TRACE_SCALE):
    """Run T iterated steps of InputPopulation.forward in one kernel.

    spikes:       i8 [T, R, C]  per-step input spike patterns (0/1)
    traces_state: f32[R, C]     trace state before step 0
    returns (new_traces, new_s): state after step T-1.
    """
    T, R, C = spikes.shape
    assert (R, C) == traces_state.shape

    # Step-invariant scalars precomputed on the host (compute_decay hoisted).
    params = jnp.array([math.exp(-dt / tau_s), trace_scale], dtype=jnp.float32)

    new_traces = pl.pallas_call(
        _input_population_kernel,
        out_shape=jax.ShapeDtypeStruct((R, C), jnp.float32),
        grid=(T,),
        in_specs=[
            pl.BlockSpec(memory_space=pltpu.SMEM),         # [decay, scale]
            pl.BlockSpec((R, C), lambda t: (0, 0)),        # initial traces (fetched once)
            pl.BlockSpec((1, R, C), lambda t: (t, 0, 0)),  # step-t spikes, streamed
        ],
        out_specs=pl.BlockSpec((R, C), lambda t: (0, 0)),  # VMEM-resident accumulator
        input_output_aliases={1: 0},                       # in-place trace update
        compiler_params=pltpu.CompilerParams(
            dimension_semantics=("arbitrary",)),           # time axis carries state
    )(params, traces_state, spikes)

    # self.s after the loop is simply the last input spike pattern; no kernel
    # writeback needed (review item: drop the redundant new_s output).
    new_s = spikes[T - 1]
    return new_traces, new_s


if __name__ == "__main__":
    key = jax.random.PRNGKey(0)
    k_spk, k_tr = jax.random.split(key)

    T = 16
    spikes = jax.random.bernoulli(
        k_spk, p=0.3, shape=(T,) + POP_SHAPE).astype(jnp.int8)
    traces_state = jax.random.uniform(k_tr, POP_SHAPE, dtype=jnp.float32)

    # Pure-JAX reference of T iterated forward() steps (computed before the
    # kernel call since the trace input is aliased onto the kernel output).
    decay = jnp.float32(math.exp(-DT / TAU_S))
    ref_traces = traces_state
    for t in range(T):
        ref_traces = ref_traces * decay + TRACE_SCALE * spikes[t].astype(jnp.float32)
    ref_traces = jax.block_until_ready(ref_traces)
    ref_s = jax.block_until_ready(spikes[T - 1])

    new_traces, new_s = input_population_forward(spikes, traces_state)
    jax.block_until_ready(new_traces)
    jax.block_until_ready(new_s)

    assert jnp.allclose(new_traces, ref_traces, atol=1e-5, rtol=1e-5)
    assert jnp.array_equal(new_s, ref_s)

    # TODO(synk): InputPopulation.forward takes an unused `spike_effects` arg;
    # it has no effect on the computation and is not modeled here.

    print("KERNEL_OK")
</pallas_src>

<mosaic_0001>
module attributes {stable_mosaic.version = 11 : i64} {
  func.func @_input_population_kernel(%arg0: i32, %arg1: memref<2xf32, #tpu.memory_space<smem>>, %arg2: memref<8x128xf32, #tpu.memory_space<vmem>>, %arg3: memref<1x8x128xi8, #tpu.memory_space<vmem>>, %arg4: memref<8x128xf32, #tpu.memory_space<vmem>>) attributes {dimension_semantics = [#tpu.dimension_semantics<arbitrary>], iteration_bounds = array<i64: 16>, scalar_prefetch = 0 : i64, scratch_operands = 0 : i64, tpu.core_type = #tpu.core_type<tc>, window_params = [{transform_indices = @transform_0, window_bounds = array<i64: 2>}, {pipeline_mode = #tpu.pipeline_mode<synchronous>, transform_indices = @transform_1, window_bounds = array<i64: 8, 128>}, {transform_indices = @transform_2, window_bounds = array<i64: 1, 8, 128>}, {pipeline_mode = #tpu.pipeline_mode<synchronous>, transform_indices = @transform_3, window_bounds = array<i64: 8, 128>}]} {
    %c0 = arith.constant 0 : index
    %0 = memref.load %arg1[%c0] : memref<2xf32, #tpu.memory_space<smem>>
    %c1 = arith.constant 1 : index
    %1 = memref.load %arg1[%c1] : memref<2xf32, #tpu.memory_space<smem>>
    %c0_i32 = arith.constant 0 : i32
    %2 = arith.cmpi eq, %arg0, %c0_i32 : i32
    %3 = arith.extui %2 : i1 to i32
    %c0_i32_0 = arith.constant 0 : i32
    %4 = arith.cmpi ne, %3, %c0_i32_0 : i32
    scf.if %4 {
      %c0_8 = arith.constant 0 : index
      %c0_9 = arith.constant 0 : index
      %15 = vector.load %arg2[%c0_8, %c0_9] : memref<8x128xf32, #tpu.memory_space<vmem>>, vector<8x128xf32>
      %c0_10 = arith.constant 0 : index
      %c0_11 = arith.constant 0 : index
      %16 = vector.load %arg4[%c0_10, %c0_11] : memref<8x128xf32, #tpu.memory_space<vmem>>, vector<8x128xf32>
      tpu.vector_store %arg4[%c0_10, %c0_11], %15 {strides = array<i32>} : memref<8x128xf32, #tpu.memory_space<vmem>>, vector<8x128xf32>,
    } else {
    }
    %c0_1 = arith.constant 0 : index
    %c0_2 = arith.constant 0 : index
    %c0_3 = arith.constant 0 : index
    %5 = vector.load %arg3[%c0_1, %c0_2, %c0_3] : memref<1x8x128xi8, #tpu.memory_space<vmem>>, vector<1x8x128xi8>
    %6 = vector.shape_cast %5 : vector<1x8x128xi8> to vector<8x128xi8>
    %7 = arith.sitofp %6 : vector<8x128xi8> to vector<8x128xf32>
    %c0_4 = arith.constant 0 : index
    %c0_5 = arith.constant 0 : index
    %8 = vector.load %arg4[%c0_4, %c0_5] : memref<8x128xf32, #tpu.memory_space<vmem>>, vector<8x128xf32>
    %9 = vector.broadcast %0 : f32 to vector<8x128xf32>
    %10 = arith.mulf %8, %9 : vector<8x128xf32>
    %11 = vector.broadcast %1 : f32 to vector<8x128xf32>
    %12 = arith.mulf %11, %7 : vector<8x128xf32>
    %13 = arith.addf %10, %12 : vector<8x128xf32>
    %c0_6 = arith.constant 0 : index
    %c0_7 = arith.constant 0 : index
    %14 = vector.load %arg4[%c0_6, %c0_7] : memref<8x128xf32, #tpu.memory_space<vmem>>, vector<8x128xf32>
    tpu.vector_store %arg4[%c0_6, %c0_7], %13 {strides = array<i32>} : memref<8x128xf32, #tpu.memory_space<vmem>>, vector<8x128xf32>,
    return
  }
  func.func @transform_0(%arg0: i32) -> i32 {
    %c0_i32 = arith.constant 0 : i32
    %c0_i32_0 = arith.constant 0 : i32
    return %c0_i32 : i32
  }
  func.func @transform_1(%arg0: i32) -> (i32, i32) {
    %c0_i32 = arith.constant 0 : i32
    %c0_i32_0 = arith.constant 0 : i32
    %c0_i32_1 = arith.constant 0 : i32
    return %c0_i32, %c0_i32_0 : i32, i32
  }
  func.func @transform_2(%arg0: i32) -> (i32, i32, i32) {
    %c0_i32 = arith.constant 0 : i32
    %c0_i32_0 = arith.constant 0 : i32
    %c0_i32_1 = arith.constant 0 : i32
    return %arg0, %c0_i32, %c0_i32_0 : i32, i32, i32
  }
  func.func @transform_3(%arg0: i32) -> (i32, i32) {
    %c0_i32 = arith.constant 0 : i32
    %c0_i32_0 = arith.constant 0 : i32
    %c0_i32_1 = arith.constant 0 : i32
    return %c0_i32, %c0_i32_0 : i32, i32
  }
}

</mosaic_0001>

<bundles_post_ra>
// kernel: tpu_custom_call.1
= control target key start
LH: loop header
LB: loop body
LE: loop exit
PB: predicated region body
PF: predicated region fallthrough
CT: control target
= control target key end

     0   :  { %8 = vsyncpa [#allocation5], 0  ;;  %s685_s0 = inlined_call_operand.vmem [shape: f32[2], index: 0, kind: input, shape index: {}]   ;;  %s686_s1 = inlined_call_operand.hbm [shape: f32[8,128], index: 1, kind: input, shape index: {}, may-alias: {1,3}]   ;;  %s687_s2 = inlined_call_operand.hbm [shape: s8[16,8,128], index: 2, kind: input, shape index: {}]   ;;  %s688_s3 = inlined_call_operand.hbm [shape: f32[8,128], index: 3, kind: output, shape index: {}, may-alias: {1,3}]  }
   0x1   :  { %9 = vsyncpa [#allocation3], 0 }
   0x2   :  { %10 = vsyncpa [#allocation8], 0 }
   0x3   :  { %12 = vsyncpa [#allocation8 + $0x1], 0 }
   0x4   :  { %13 = vsyncpa [#allocation4], 0  ;;  %s549_s12 = smov 0   ;;  %s551_s13 = smov 0  }
   0x5   :  { %s553_s14 = smov 0   ;;  %s555_s15 = smov 0  }
   0x6 LB: > { %s568_s16 = sadd.s32 4294967295, %s523_s15   ;;  %p81_p0 = scmp.ne.s32.totalorder %s515_s13, %s511_s12  ;;  %s523_s15 = sphi %s555_s15, %s706_s15   ;;  %s519_s14 = sphi %s553_s14, %s705_s14   ;;  %s515_s13 = sphi %s551_s13, %s704_s13   ;;  %s511_s12 = sphi %s549_s12, %s703_s12  }
   0x7   : > { %p689_p1 = scmp.eq.s32.totalorder %s568_s16, 0  ;;  %p301_p2 = scmp.ge.s32.totalorder %s523_s15, 1 }
   0x8   : > { %p113_p3 = scmp.lt.s32.totalorder %s523_s15, 17  ;;  %s126_s20 = sshll.u32 %s685_s0, 4  ;;  %s127_s20 = int_to_ptr.vmem [resolvable:$true] %s126_s20 }
   0x9   : > { %p577_p5 = por %p689_p1, %p81_p0  ;;  %s525_s22 = smov [#allocation6]  }
   0xa   : > { %p584_p6 = pnand %p301_p2, %p113_p3  ;;  %s137_s23 = sshll.u32 %s525_s22, 4  ;;  %s138_s23 = int_to_ptr.vmem [resolvable:$true] %s137_s23 }
   0xb   : > { %s692_s17 = scalar_select %p577_p5, 1, 0 }
   0xc   : > { %s693_s21 = scalar_select %p584_p6, 1, 0 }
   0xd   : > { %p331_p7 = pneg %p584_p6  ;;  %s597_s25 = sadd.s32 1, %s523_s15  }
   0xe   : > { %s65_s26 = ssub.s32 %s523_s15, %s597_s25  ;;  %s384_s27 = scalar_lea.vmem %s127_s20, 16 }
   0xf   : > { %p592_p8 = pnand %p331_p7, %p689_p1  ;;  %p385_p9 = scmp.ne.s32.totalorder %s127_s20, %s384_s27 }
  0x10   : > { %p392_p13 = scmp.lt.s32.totalorder %s127_s20, %s127_s20  ;;  %p393_p0 = scmp.lt.s32.totalorder %s384_s27, %s384_s27 }
  0x11   : > { %p386_p10 = pneg %p592_p8 }
  0x12   : > { %p394_p2 = por %p393_p0, %p392_p13 }
  0x13   : > { %p387_p11 = pnand %p386_p10, %p385_p9 }
  0x15   : > { %p388_p12 = pneg %p387_p11 }
  0x17   : > { %p395_p3 = pnand %p394_p2, %p388_p12 }
  0x19   : > { %398 = shalt.err (!%p395_p3)
}
  0x1a   : > { %s526_s28 = smov [#allocation2]   ;;  %s410_s29 = scalar_lea.vmem %s138_s23, 128 }
  0x1b   : > { %334 = dma.vmem_to_smem (!%p592_p8), %s127_s20, 16, %s526_s28, [#allocation5]  }
  0x1c   : > { %p411_p7 = scmp.ne.s32.totalorder %s138_s23, %s410_s29  ;;  %p418_p5 = scmp.lt.s32.totalorder %s138_s23, %s138_s23 }
  0x1d   : > { %p419_p6 = scmp.lt.s32.totalorder %s410_s29, %s410_s29 }
  0x1e   : > { %p413_p4 = pnand %p411_p7, %p386_p10 }
  0x1f   : > { %p420_p9 = por %p419_p6, %p418_p5 }
  0x20   : > { %p414_p1 = pneg %p413_p4 }
  0x22   : > { %p421_p11 = pnand %p420_p9, %p414_p1 }
  0x24   : > { %424 = shalt.err (!%p421_p11)
}
  0x25   : > { %337 = dma.hbm_to_vmem [thread:$0]  (!%p592_p8), %s686_s1, 128, %s138_s23, [#allocation3]  }
  0x26   : > { %p66_p4 = scmp.eq.s32.totalorder %s65_s26, 0  ;;  %s68_s5 = sadd.s32 1, %s519_s14 }
  0x27   : > { %p75_p10 = scmp.ne.s32.totalorder %s519_s14, %s515_s13  ;;  %p76_p5 = scmp.eq.s32.totalorder %s523_s15, 0 }
  0x28   : > { %s615_s6 = scalar_select %p66_p4, %s519_s14, %s68_s5  }
  0x29   : > { %p77_p1 = por %p76_p5, %p75_p10  ;;  %p344_p6 = scmp.lt.s32.totalorder %s523_s15, 16 }
  0x2a   : > { %s148_s7 = sand.u32 1, %s519_s14   ;;  %s306_s8 = sshll.u32 %s523_s15, 5 }
  0x2b   : > { %s305_s9 = sshll.u32 %s148_s7, 1  ;;  %s623_s12 = scalar_lea.hbm %s687_s2, %s306_s8 }
  0x2c   : > { %s152_s18 = scalar_lea.vmem [#allocation7], %s305_s9  ;;  %p625_p8 = pnand %p344_p6, %p77_p1 }
  0x2d   : > { %s159_s19 = sshll.u32 %s152_s18, 4  ;;  %s149_s22 = scalar_lea.sflag [#allocation8], %s148_s7  ;;  %s160_s19 = int_to_ptr.vmem [resolvable:$true] %s159_s19 }
  0x2e   : > { %s425_s23 = scalar_lea.hbm %s623_s12, 32  ;;  %p427_p13 = pneg %p625_p8 }
  0x2f   : > { %p426_p12 = scmp.ne.s32.totalorder %s623_s12, %s425_s23  ;;  %s430_s26 = scalar_lea.hbm %s687_s2, 512 }
  0x30   : > { %p431_p3 = scmp.lt.s32.totalorder %s623_s12, %s687_s2  ;;  %p432_p7 = scmp.lt.s32.totalorder %s430_s26, %s425_s23 }
  0x31   : > { %p428_p0 = pnand %p427_p13, %p426_p12 }
  0x32   : > { %p433_p9 = por %p432_p7, %p431_p3 }
  0x33   : > { %p429_p2 = pneg %p428_p0 }
  0x35   : > { %p434_p11 = pnand %p433_p9, %p429_p2 }
  0x37   : > { %437 = shalt.err (!%p434_p11)
}
  0x38   : > { %s438_s29 = scalar_lea.vmem %s160_s19, 32  ;;  %s527_s30 = smov [#allocation7]  }
  0x39   : > { %p439_p4 = scmp.ne.s32.totalorder %s160_s19, %s438_s29  ;;  %s443_s4 = sshll.u32 %s527_s30, 4  ;;  %s444_s4 = int_to_ptr.vmem [resolvable:$false] %s443_s4 }
  0x3a   : > { %s445_s5 = scalar_lea.vmem %s444_s4, 64  ;;  %p446_p1 = scmp.lt.s32.totalorder %s160_s19, %s444_s4 }
  0x3b   : > { %p441_p10 = pnand %p439_p4, %p427_p13  ;;  %p447_p6 = scmp.lt.s32.totalorder %s445_s5, %s438_s29 }
  0x3d   : > { %p442_p5 = pneg %p441_p10  ;;  %p448_p12 = por %p447_p6, %p446_p1 }
  0x3f   : > { %p449_p0 = pnand %p448_p12, %p442_p5 }
  0x41   : > { %452 = shalt.err (!%p449_p0)
}
  0x42   : > { %341 = dma.hbm_to_vmem [thread:$0]  (!%p625_p8), %s623_s12, 32, %s160_s19, %s149_s22  }
  0x43   : > { %p696_p2 = scmp.ne.s32.totalorder %s693_s21, 0 }
  0x44   : > { %p697_p3 = scmp.eq.s32.totalorder (!%p696_p2), %s568_s16, 0 }
  0x45   : > { %168 = sbr.rel (%p696_p2) target bundleno = 109 (0x6d), region = 32 }
  0x4a   : > { %494 = dma.done.wait (%p697_p3), [#allocation5], 16   ;;  %p698_p13 = pmov %p697_p3 }
  0x4b   : > { %p699_p7 = pmov %p697_p3 }
  0x4c   : > { %496 = vsyncadd (%p698_p13), [#allocation5], 4294967280 }
  0x4d   : > { %498 = dma.done.wait (%p699_p7), [#allocation3], 128   ;;  %p700_p9 = pmov %p697_p3 }
  0x4e   : > { %s178_s7 = sand.u32 1, %s515_s13   ;;  %p701_p8 = scmp.ne.s32.totalorder %s692_s17, 0 }
  0x4f   : > { %500 = vsyncadd (%p700_p9), [#allocation3], 4294967168  ;;  %s310_s8 = sshll.u32 %s178_s7, 1  ;;  %s179_s9 = scalar_lea.sflag [#allocation8], %s178_s7 }
  0x50   : > { %s182_s10 = scalar_lea.vmem [#allocation7], %s310_s8 }
  0x51   : > { %502 = dma.done.wait (%p701_p8), %s179_s9, 32  }
  0x52   : > { %504 = vsyncadd (%p701_p8), %s179_s9, 4294967264 }
  0x53   : > { %187 = sfence }
  0x54   : > { %s201_s21 = sld [smem:[#allocation2]]  ;;  %p702_p11 = scmp.ne.s32.totalorder %s568_s16, 0 }
  0x55   : > { %s311_s11 = sld [smem:[#allocation2 + $0x1]] }
  0x56   : > { %206 = sbr.rel (%p702_p11) target bundleno = 93 (0x5d), region = 48 }
  0x5b   : > { %v207_v0 = vld [vmem:[#allocation6] sm:$0xff] }
  0x5c   : > { %208 = vst [vmem:[#allocation9] sm:$0xff] %v207_v0 }
  0x5d PF: > { %v209_v1 = vld [vmem:[%s182_s10] sm:$0x3]  ;;  %v213_v3 = vstv %s201_s21  ;;  %v215_v5 = vstv %s311_s11  ;;  %s528_s17 = smov [#allocation9]   ;;  %p347_p4 = scmp.eq.s32.totalorder %s568_s16, 15 }
  0x5e   : > { %v210_v4 = vunpack.c.0.s8 %v209_v1  ;;  %s226_s12 = sshll.u32 %s528_s17, 4  ;;  %s227_s12 = int_to_ptr.vmem [resolvable:$true] %s226_s12 }
  0x5f   : > { %s453_s18 = scalar_lea.vmem %s227_s12, 128  ;;  %p460_p6 = scmp.lt.s32.totalorder %s227_s12, %s227_s12 }
  0x60   : > { %v211_v6 = vcvt.s32.f32 %v210_v4  ;;  %p454_p10 = scmp.ne.s32.totalorder %s227_s12, %s453_s18  ;;  %p461_p12 = scmp.lt.s32.totalorder %s453_s18, %s453_s18 }
  0x62   : > { %v216_v8 = vmul.f32 %v215_v5, %v211_v6  ;;  %p455_p5 = pnand %p454_p10, %p347_p4  ;;  %p462_p0 = por %p461_p12, %p460_p6 }
  0x63   : > { %v212_v2 = vld [vmem:[#allocation9] sm:$0xff] }
  0x64   : > { %v214_v7 = vmul.f32 %v213_v3, %v212_v2  ;;  %p456_p1 = pneg %p455_p5 }
  0x66   : > { %v217_v9 = vadd.f32 %v216_v8, %v214_v7  ;;  %p463_p2 = pnand %p462_p0, %p456_p1 }
  0x68   : > { %218 = vst [vmem:[#allocation9] sm:$0xff] %v217_v9 }
  0x69   : > { %466 = shalt.err (!%p463_p2)
}
  0x6a   : > { %328 = dma.vmem_to_hbm [thread:$0]  (%p347_p4), %s227_s12, 128, %s688_s3, [#allocation4]  }
  0x6b   : > { %506 = dma.done.wait (%p347_p4), [#allocation4], 128  }
  0x6c   : > { %508 = vsyncadd (%p347_p4), [#allocation4], 4294967168 }
  0x6d PF: > { %p16_p3 = scmp.ge.s32.totalorder %s597_s25, 18   ;;  %s703_s12 = smov %s515_s13 }
  0x6e   : > { %s704_s13 = smov %s519_s14  ;;  %s705_s14 = smov %s615_s6 }
  0x6f   : > { %s706_s15 = smov %s597_s25  ;;  %18 = sbr.rel (!%p16_p3) target bundleno = 6 (0x6), region = 83 }
  0x74   :  { %239 = vsyncpa [#allocation3], 1 }
  0x75   :  { %241 = vsyncpa [#allocation3 + $0x1], 1 }
  0x76   :  { %242 = vsyncpa [#allocation8], 1 }
  0x77   :  { %244 = vsyncpa [#allocation8 + $0x1], 1 }
  0x78   :  { %245 = vsyncpa [#allocation4], 1 }
  0x79   :  { %247 = vsyncpa [#allocation4 + $0x1], 1 }
  0x7a   :  { %248 = vsyncpa [#allocation5], 1 }
  0x7b   :  { %250 = vsyncpa [#allocation5 + $0x1], 1 }

</bundles_post_ra>
